<compile_context>
chip_gen: v7x
topology: tpu7x:2x2x1
jax: 0.10.0
libtpu: 0.0.40
codegen_flags: <defaults>
</compile_context>

<pallas_src>
import functools

import jax
import jax.numpy as jnp
from jax.experimental import pallas as pl
from jax.experimental.pallas import tpu as pltpu

# --- dimensions implied by the module -------------------------------------
OBS_DIM = 35
ACT_DIM = 8            # OBS_DIM + ACT_DIM == 43  (nn.Linear(43, 128))
IN_DIM = OBS_DIM + ACT_DIM
CTX_DIM = 8
HID = 128              # nn.Linear(43,128) -> ReLU -> nn.Linear(128,128)
R_HID = 64             # routing hidden width (zero-padded to 128 in-kernel)
N_MODULES = 4          # number of experts in BaseNetwork / Routing
OUT_DIM = 1            # BaseNetwork(1, 128) -> scalar Q value

FUSED_N = N_MODULES * HID + HID   # 512 module-head cols + 128 padded router cols


# --- kernel ----------------------------------------------------------------
def qfunc_kernel(x_ref, ctx_ref,
                 w1_ref, b1_ref,            # base layer 1 (43 -> 128)
                 wf_ref, bf_ref,            # fused (128 -> 640): heads | router-h
                 wr1c_ref,                  # ctx part of router layer 1 (8 -> 128pad)
                 wr2_ref, br2_ref,          # router layer 2 (128pad -> 4)
                 wdiag_ref, bm2_ref,        # block-diag per-module reduce (512 -> 4)
                 out_ref, *, approx_recip):
    wdt = w1_ref.dtype   # weight compute dtype (bf16 or f32); accumulation is f32

    def mm(a, w_ref):
        return jnp.dot(a.astype(wdt), w_ref[...],
                       preferred_element_type=jnp.float32)

    # base layer 1: (TB,43) @ (43,128) -> ReLU.  Base layer 2 (w2/b2) has no
    # ReLU after it and is folded into wf/bf/wr2 chain host-side.
    relu1 = jnp.maximum(mm(x_ref[...], w1_ref) + b1_ref[...], 0.0)     # (TB,128)

    # one fused matmul feeds both the module heads and the router hidden layer
    z = mm(relu1, wf_ref) + bf_ref[...]                                # (TB,640)
    a = jnp.maximum(z[:, :N_MODULES * HID], 0.0)                       # (TB,512)
    r = jnp.maximum(z[:, N_MODULES * HID:] + mm(ctx_ref[...], wr1c_ref),
                    0.0)                                               # (TB,128)

    # router softmax over N_MODULES experts (padded hidden cols are exact zeros)
    logits = mm(r, wr2_ref) + br2_ref[...]                             # (TB,4)
    m = jnp.max(logits, axis=-1, keepdims=True)
    e = jnp.exp(logits - m)
    wts = e * pl.reciprocal(jnp.sum(e, axis=-1, keepdims=True),
                            approx=approx_recip)

    # block-diagonal matmul performs the K per-module 128-lane reductions on MXU
    q_all = mm(a, wdiag_ref) + bm2_ref[...]                            # (TB,4)
    out_ref[...] = jnp.sum(wts * q_all, axis=-1,
                           keepdims=True).astype(out_ref.dtype)        # (TB,1)


# --- host-side weight repacking ---------------------------------------------
def _repack_params(params, weight_dtype):
    """Fold/fuse weights (in f32) into the kernel layout, then cast."""
    (w1, b1, w2, b2, wr1, br1, wr2, br2, wm1, bm1, wm2, bm2) = params
    f32 = jnp.float32
    cast = lambda w: w.astype(weight_dtype)

    # fuse K module heads: (K,128,128) -> (128, K*128)
    wm1_flat = jnp.transpose(wm1.astype(f32), (1, 0, 2)).reshape(HID,
                                                                 N_MODULES * HID)
    bm1_flat = bm1.astype(f32).reshape(1, N_MODULES * HID)

    # router first layer split into base-feature part and ctx part
    wr1h = wr1[:HID].astype(f32)                               # (128, 64)
    wr1c = wr1[HID:].astype(f32)                               # (8, 64)
    br1f = br1.astype(f32).reshape(1, R_HID)

    # --- fold base layer 2 (no ReLU after it) into its consumers, in f32 ----
    w2f = w2.astype(f32)
    b2f = b2.astype(f32).reshape(1, HID)
    wm1_fold = w2f @ wm1_flat                                  # (128, 512)
    bm1_fold = b2f @ wm1_flat + bm1_flat                       # (1, 512)
    wr1h_fold = w2f @ wr1h                                     # (128, 64)
    br1_fold = b2f @ wr1h + br1f                               # (1, 64)

    # pad router hidden 64 -> 128 so the fused-dot slices stay on 128-lane bounds
    pad = HID - R_HID
    wr1h_pad = jnp.pad(wr1h_fold, ((0, 0), (0, pad)))          # (128, 128)
    br1_pad = jnp.pad(br1_fold, ((0, 0), (0, pad)))            # (1, 128)
    wr1c_pad = jnp.pad(wr1c, ((0, 0), (0, pad)))               # (8, 128)
    wr2_pad = jnp.pad(wr2.astype(f32), ((0, pad), (0, 0)))     # (128, 4)

    # single fused (128, 640) weight: [module heads | padded router hidden]
    w_fused = jnp.concatenate([wm1_fold, wr1h_pad], axis=1)    # (128, 640)
    b_fused = jnp.concatenate([bm1_fold, br1_pad], axis=1)     # (1, 640)

    # block-diagonal per-module reduction: wdiag[k*128:(k+1)*128, k] = wm2[k]
    eye = jnp.eye(N_MODULES, dtype=f32)
    wdiag = (wm2.astype(f32)[:, :, None] * eye[:, None, :]).reshape(
        N_MODULES * HID, N_MODULES)

    return (cast(w1), b1.astype(f32).reshape(1, HID),
            cast(w_fused), b_fused,
            cast(wr1c_pad),
            cast(wr2_pad), br2.astype(f32).reshape(1, N_MODULES),
            cast(wdiag), bm2.astype(f32).reshape(1, N_MODULES))


# --- wrapper ----------------------------------------------------------------
def _round_up(x, m):
    return ((x + m - 1) // m) * m


def qfunction_forward(obs, action, ctx, params, *,
                      weight_dtype=jnp.bfloat16, batch_tile=2048):
    """obs (B,35), action (B,8), ctx (B,8) -> Q (B,1).  f32 in/out."""
    B = obs.shape[0]
    x = jnp.concatenate([obs, action], axis=-1)        # (B,43), done in XLA
    weights = _repack_params(params, weight_dtype)

    # Batch tile: expose >=2 parallel grid steps when possible (v7x has 2 TCs),
    # otherwise cap at batch_tile.  TB is a multiple of 8 unless it equals B.
    if B <= 2 * batch_tile:
        TB = min(B, _round_up(pl.cdiv(B, 2), 8))
    else:
        TB = batch_tile
    grid = (pl.cdiv(B, TB),)

    batched = lambda shape: pl.BlockSpec(shape, lambda i: (i, 0))
    resident = lambda w: pl.BlockSpec(w.shape, lambda i: (0, 0))

    in_specs = ([batched((TB, IN_DIM)),
                 batched((TB, CTX_DIM))]
                + [resident(w) for w in weights])
    out_spec = batched((TB, OUT_DIM))

    approx = jnp.dtype(weight_dtype) != jnp.dtype(jnp.float32)
    kernel = functools.partial(qfunc_kernel, approx_recip=bool(approx))

    return pl.pallas_call(
        kernel,
        grid=grid,
        in_specs=in_specs,
        out_specs=out_spec,
        out_shape=jax.ShapeDtypeStruct((B, OUT_DIM), jnp.float32),
        compiler_params=pltpu.CompilerParams(
            dimension_semantics=("parallel",),
            vmem_limit_bytes=48 * 1024 * 1024),
    )(x, ctx, *weights)


# --- deterministic parameter init (torch-style uniform ±1/sqrt(fan_in)) ----
def init_params(key):
    def lin(key, fan_in, shape):
        bound = 1.0 / jnp.sqrt(jnp.float32(fan_in))
        return jax.random.uniform(key, shape, jnp.float32, -bound, bound)

    ks = jax.random.split(key, 12)
    w1 = lin(ks[0], IN_DIM, (IN_DIM, HID))
    b1 = lin(ks[1], IN_DIM, (1, HID))
    w2 = lin(ks[2], HID, (HID, HID))
    b2 = lin(ks[3], HID, (1, HID))
    wr1 = lin(ks[4], HID + CTX_DIM, (HID + CTX_DIM, R_HID))
    br1 = lin(ks[5], HID + CTX_DIM, (1, R_HID))
    wr2 = lin(ks[6], R_HID, (R_HID, N_MODULES))
    br2 = lin(ks[7], R_HID, (1, N_MODULES))
    wm1 = lin(ks[8], HID, (N_MODULES, HID, HID))
    bm1 = lin(ks[9], HID, (N_MODULES, HID))
    wm2 = lin(ks[10], HID, (N_MODULES, HID))
    bm2 = lin(ks[11], HID, (1, N_MODULES))
    return (w1, b1, w2, b2, wr1, br1, wr2, br2, wm1, bm1, wm2, bm2)


# --- pure-JAX reference for correctness ------------------------------------
def reference_forward(obs, action, ctx, params):
    (w1, b1, w2, b2, wr1, br1, wr2, br2, wm1, bm1, wm2, bm2) = params
    x = jnp.concatenate([obs, action], axis=-1)
    h = jnp.maximum(x @ w1 + b1, 0.0)
    h = h @ w2 + b2
    rin = jnp.concatenate([h, ctx], axis=-1)
    r = jnp.maximum(rin @ wr1 + br1, 0.0)
    wts = jax.nn.softmax(r @ wr2 + br2, axis=-1)
    out = jnp.zeros((obs.shape[0], OUT_DIM), jnp.float32)
    for k in range(N_MODULES):
        hk = jnp.maximum(h @ wm1[k] + bm1[k][None, :], 0.0)
        qk = jnp.sum(hk * wm2[k][None, :], axis=-1, keepdims=True) + bm2[0, k]
        out = out + wts[:, k:k + 1] * qk
    return out


if __name__ == "__main__":
    key = jax.random.PRNGKey(0)
    k_obs, k_act, k_ctx, k_par, k_big = jax.random.split(key, 5)

    params = init_params(k_par)

    # --- small batch, single tile -----------------------------------------
    B = 8
    obs = jax.random.normal(k_obs, (B, OBS_DIM), jnp.float32)
    action = jax.random.normal(k_act, (B, ACT_DIM), jnp.float32)
    ctx = jax.random.normal(k_ctx, (B, CTX_DIM), jnp.float32)
    ref = reference_forward(obs, action, ctx, params)

    # f32-weight path: exact-reciprocal softmax, tight check
    out_f32 = jax.block_until_ready(
        qfunction_forward(obs, action, ctx, params, weight_dtype=jnp.float32))
    assert out_f32.shape == (B, OUT_DIM)
    assert jnp.allclose(out_f32, ref, atol=2e-3, rtol=2e-3), \
        "f32 mismatch vs reference"

    # bf16-weight path (default): looser check vs the f32 reference
    out_bf16 = jax.block_until_ready(qfunction_forward(obs, action, ctx, params))
    assert out_bf16.shape == (B, OUT_DIM)
    assert jnp.allclose(out_bf16, ref, atol=5e-2, rtol=5e-2), \
        "bf16 mismatch vs reference"

    # --- larger batch: multi-tile grid with a partial last tile ------------
    B2 = 300
    ko, ka, kc = jax.random.split(k_big, 3)
    obs2 = jax.random.normal(ko, (B2, OBS_DIM), jnp.float32)
    act2 = jax.random.normal(ka, (B2, ACT_DIM), jnp.float32)
    ctx2 = jax.random.normal(kc, (B2, CTX_DIM), jnp.float32)
    out2 = jax.block_until_ready(
        qfunction_forward(obs2, act2, ctx2, params, weight_dtype=jnp.float32))
    ref2 = reference_forward(obs2, act2, ctx2, params)
    assert out2.shape == (B2, OUT_DIM)
    assert jnp.allclose(out2, ref2, atol=2e-3, rtol=2e-3), \
        "multi-tile f32 mismatch vs reference"

    print("KERNEL_OK")
</pallas_src>

<mosaic_0001>
module attributes {stable_mosaic.version = 11 : i64} {
  func.func @qfunc_kernel(%arg0: i32, %arg1: memref<8x43xf32, #tpu.memory_space<vmem>>, %arg2: memref<8x8xf32, #tpu.memory_space<vmem>>, %arg3: memref<43x128xf32, #tpu.memory_space<vmem>>, %arg4: memref<1x128xf32, #tpu.memory_space<vmem>>, %arg5: memref<128x640xf32, #tpu.memory_space<vmem>>, %arg6: memref<1x640xf32, #tpu.memory_space<vmem>>, %arg7: memref<8x128xf32, #tpu.memory_space<vmem>>, %arg8: memref<128x4xf32, #tpu.memory_space<vmem>>, %arg9: memref<1x4xf32, #tpu.memory_space<vmem>>, %arg10: memref<512x4xf32, #tpu.memory_space<vmem>>, %arg11: memref<1x4xf32, #tpu.memory_space<vmem>>, %arg12: memref<8x1xf32, #tpu.memory_space<vmem>>) attributes {dimension_semantics = [#tpu.dimension_semantics<parallel>], iteration_bounds = array<i64: 1>, scalar_prefetch = 0 : i64, scratch_operands = 0 : i64, tpu.core_type = #tpu.core_type<tc>, window_params = [{transform_indices = @transform_0, window_bounds = array<i64: 8, 43>}, {transform_indices = @transform_1, window_bounds = array<i64: 8, 8>}, {pipeline_mode = #tpu.pipeline_mode<synchronous>, transform_indices = @transform_2, window_bounds = array<i64: 43, 128>}, {pipeline_mode = #tpu.pipeline_mode<synchronous>, transform_indices = @transform_3, window_bounds = array<i64: 1, 128>}, {pipeline_mode = #tpu.pipeline_mode<synchronous>, transform_indices = @transform_4, window_bounds = array<i64: 128, 640>}, {pipeline_mode = #tpu.pipeline_mode<synchronous>, transform_indices = @transform_5, window_bounds = array<i64: 1, 640>}, {pipeline_mode = #tpu.pipeline_mode<synchronous>, transform_indices = @transform_6, window_bounds = array<i64: 8, 128>}, {pipeline_mode = #tpu.pipeline_mode<synchronous>, transform_indices = @transform_7, window_bounds = array<i64: 128, 4>}, {pipeline_mode = #tpu.pipeline_mode<synchronous>, transform_indices = @transform_8, window_bounds = array<i64: 1, 4>}, {pipeline_mode = #tpu.pipeline_mode<synchronous>, transform_indices = @transform_9, window_bounds = array<i64: 512, 4>}, {pipeline_mode = #tpu.pipeline_mode<synchronous>, transform_indices = @transform_10, window_bounds = array<i64: 1, 4>}, {transform_indices = @transform_11, window_bounds = array<i64: 8, 1>}]} {
    %c0 = arith.constant 0 : index
    %c0_0 = arith.constant 0 : index
    %0 = vector.load %arg1[%c0, %c0_0] : memref<8x43xf32, #tpu.memory_space<vmem>>, vector<8x43xf32>
    %c0_1 = arith.constant 0 : index
    %c0_2 = arith.constant 0 : index
    %1 = vector.load %arg3[%c0_1, %c0_2] : memref<43x128xf32, #tpu.memory_space<vmem>>, vector<43x128xf32>
    %cst = arith.constant dense<0.000000e+00> : vector<8x128xf32>
    %2 = tpu.matmul %0, %1, %cst {dimension_numbers = #tpu.dot_dimension_numbers<[1], [0], [0], [1], [0, 0, 1, 1], [], []>} : vector<8x43xf32>, vector<43x128xf32>, vector<8x128xf32> -> vector<8x128xf32>
    %c0_3 = arith.constant 0 : index
    %c0_4 = arith.constant 0 : index
    %3 = vector.load %arg4[%c0_3, %c0_4] : memref<1x128xf32, #tpu.memory_space<vmem>>, vector<1x128xf32>
    %4 = vector.broadcast %3 : vector<1x128xf32> to vector<8x128xf32>
    %5 = arith.addf %2, %4 : vector<8x128xf32>
    %cst_5 = arith.constant 0.000000e+00 : f32
    %6 = vector.broadcast %cst_5 : f32 to vector<8x128xf32>
    %7 = arith.maximumf %5, %6 : vector<8x128xf32>
    %c0_6 = arith.constant 0 : index
    %c0_7 = arith.constant 0 : index
    %8 = vector.load %arg5[%c0_6, %c0_7] : memref<128x640xf32, #tpu.memory_space<vmem>>, vector<128x640xf32>
    %cst_8 = arith.constant dense<0.000000e+00> : vector<8x640xf32>
    %9 = tpu.matmul %7, %8, %cst_8 {dimension_numbers = #tpu.dot_dimension_numbers<[1], [0], [0], [1], [0, 0, 1, 1], [], []>} : vector<8x128xf32>, vector<128x640xf32>, vector<8x640xf32> -> vector<8x640xf32>
    %c0_9 = arith.constant 0 : index
    %c0_10 = arith.constant 0 : index
    %10 = vector.load %arg6[%c0_9, %c0_10] : memref<1x640xf32, #tpu.memory_space<vmem>>, vector<1x640xf32>
    %11 = vector.broadcast %10 : vector<1x640xf32> to vector<8x640xf32>
    %12 = arith.addf %9, %11 : vector<8x640xf32>
    %13 = vector.extract_strided_slice %12 {offsets = [0, 0], sizes = [8, 512], strides = [1, 1]} : vector<8x640xf32> to vector<8x512xf32>
    %cst_11 = arith.constant 0.000000e+00 : f32
    %14 = vector.broadcast %cst_11 : f32 to vector<8x512xf32>
    %15 = arith.maximumf %13, %14 : vector<8x512xf32>
    %16 = vector.extract_strided_slice %12 {offsets = [0, 512], sizes = [8, 128], strides = [1, 1]} : vector<8x640xf32> to vector<8x128xf32>
    %c0_12 = arith.constant 0 : index
    %c0_13 = arith.constant 0 : index
    %17 = vector.load %arg2[%c0_12, %c0_13] : memref<8x8xf32, #tpu.memory_space<vmem>>, vector<8x8xf32>
    %c0_14 = arith.constant 0 : index
    %c0_15 = arith.constant 0 : index
    %18 = vector.load %arg7[%c0_14, %c0_15] : memref<8x128xf32, #tpu.memory_space<vmem>>, vector<8x128xf32>
    %cst_16 = arith.constant dense<0.000000e+00> : vector<8x128xf32>
    %19 = tpu.matmul %17, %18, %cst_16 {dimension_numbers = #tpu.dot_dimension_numbers<[1], [0], [0], [1], [0, 0, 1, 1], [], []>} : vector<8x8xf32>, vector<8x128xf32>, vector<8x128xf32> -> vector<8x128xf32>
    %20 = arith.addf %16, %19 : vector<8x128xf32>
    %cst_17 = arith.constant 0.000000e+00 : f32
    %21 = vector.broadcast %cst_17 : f32 to vector<8x128xf32>
    %22 = arith.maximumf %20, %21 : vector<8x128xf32>
    %c0_18 = arith.constant 0 : index
    %c0_19 = arith.constant 0 : index
    %23 = vector.load %arg8[%c0_18, %c0_19] : memref<128x4xf32, #tpu.memory_space<vmem>>, vector<128x4xf32>
    %cst_20 = arith.constant dense<0.000000e+00> : vector<8x4xf32>
    %24 = tpu.matmul %22, %23, %cst_20 {dimension_numbers = #tpu.dot_dimension_numbers<[1], [0], [0], [1], [0, 0, 1, 1], [], []>} : vector<8x128xf32>, vector<128x4xf32>, vector<8x4xf32> -> vector<8x4xf32>
    %c0_21 = arith.constant 0 : index
    %c0_22 = arith.constant 0 : index
    %25 = vector.load %arg9[%c0_21, %c0_22] : memref<1x4xf32, #tpu.memory_space<vmem>>, vector<1x4xf32>
    %26 = vector.broadcast %25 : vector<1x4xf32> to vector<8x4xf32>
    %27 = arith.addf %24, %26 : vector<8x4xf32>
    %cst_23 = arith.constant dense<0xFF800000> : vector<8xf32>
    %28 = vector.multi_reduction <maximumf>, %27, %cst_23 [1] : vector<8x4xf32> to vector<8xf32>
    %29 = vector.shape_cast %28 : vector<8xf32> to vector<8x1xf32>
    %30 = vector.broadcast %29 : vector<8x1xf32> to vector<8x4xf32>
    %31 = arith.subf %27, %30 : vector<8x4xf32>
    %32 = math.exp %31 : vector<8x4xf32>
    %cst_24 = arith.constant dense<0.000000e+00> : vector<8xf32>
    %33 = vector.multi_reduction <add>, %32, %cst_24 [1] : vector<8x4xf32> to vector<8xf32>
    %34 = vector.shape_cast %33 : vector<8xf32> to vector<8x1xf32>
    %35 = tpu.reciprocal %34 : vector<8x1xf32> -> vector<8x1xf32>
    %36 = vector.broadcast %35 : vector<8x1xf32> to vector<8x4xf32>
    %37 = arith.mulf %32, %36 : vector<8x4xf32>
    %c0_25 = arith.constant 0 : index
    %c0_26 = arith.constant 0 : index
    %38 = vector.load %arg10[%c0_25, %c0_26] : memref<512x4xf32, #tpu.memory_space<vmem>>, vector<512x4xf32>
    %cst_27 = arith.constant dense<0.000000e+00> : vector<8x4xf32>
    %39 = tpu.matmul %15, %38, %cst_27 {dimension_numbers = #tpu.dot_dimension_numbers<[1], [0], [0], [1], [0, 0, 1, 1], [], []>} : vector<8x512xf32>, vector<512x4xf32>, vector<8x4xf32> -> vector<8x4xf32>
    %c0_28 = arith.constant 0 : index
    %c0_29 = arith.constant 0 : index
    %40 = vector.load %arg11[%c0_28, %c0_29] : memref<1x4xf32, #tpu.memory_space<vmem>>, vector<1x4xf32>
    %41 = vector.broadcast %40 : vector<1x4xf32> to vector<8x4xf32>
    %42 = arith.addf %39, %41 : vector<8x4xf32>
    %43 = arith.mulf %37, %42 : vector<8x4xf32>
    %cst_30 = arith.constant dense<0.000000e+00> : vector<8xf32>
    %44 = vector.multi_reduction <add>, %43, %cst_30 [1] : vector<8x4xf32> to vector<8xf32>
    %45 = vector.shape_cast %44 : vector<8xf32> to vector<8x1xf32>
    %c0_31 = arith.constant 0 : index
    %c0_32 = arith.constant 0 : index
    %46 = vector.load %arg12[%c0_31, %c0_32] : memref<8x1xf32, #tpu.memory_space<vmem>>, vector<8x1xf32>
    tpu.vector_store %arg12[%c0_31, %c0_32], %45 {strides = array<i32>} : memref<8x1xf32, #tpu.memory_space<vmem>>, vector<8x1xf32>,
    return
  }
  func.func @transform_0(%arg0: i32) -> (i32, i32) {
    %c0_i32 = arith.constant 0 : i32
    %c0_i32_0 = arith.constant 0 : i32
    return %arg0, %c0_i32 : i32, i32
  }
  func.func @transform_1(%arg0: i32) -> (i32, i32) {
    %c0_i32 = arith.constant 0 : i32
    %c0_i32_0 = arith.constant 0 : i32
    return %arg0, %c0_i32 : i32, i32
  }
  func.func @transform_2(%arg0: i32) -> (i32, i32) {
    %c0_i32 = arith.constant 0 : i32
    %c0_i32_0 = arith.constant 0 : i32
    %c0_i32_1 = arith.constant 0 : i32
    return %c0_i32, %c0_i32_0 : i32, i32
  }
  func.func @transform_3(%arg0: i32) -> (i32, i32) {
    %c0_i32 = arith.constant 0 : i32
    %c0_i32_0 = arith.constant 0 : i32
    %c0_i32_1 = arith.constant 0 : i32
    return %c0_i32, %c0_i32_0 : i32, i32
  }
  func.func @transform_4(%arg0: i32) -> (i32, i32) {
    %c0_i32 = arith.constant 0 : i32
    %c0_i32_0 = arith.constant 0 : i32
    %c0_i32_1 = arith.constant 0 : i32
    return %c0_i32, %c0_i32_0 : i32, i32
  }
  func.func @transform_5(%arg0: i32) -> (i32, i32) {
    %c0_i32 = arith.constant 0 : i32
    %c0_i32_0 = arith.constant 0 : i32
    %c0_i32_1 = arith.constant 0 : i32
    return %c0_i32, %c0_i32_0 : i32, i32
  }
  func.func @transform_6(%arg0: i32) -> (i32, i32) {
    %c0_i32 = arith.constant 0 : i32
    %c0_i32_0 = arith.constant 0 : i32
    %c0_i32_1 = arith.constant 0 : i32
    return %c0_i32, %c0_i32_0 : i32, i32
  }
  func.func @transform_7(%arg0: i32) -> (i32, i32) {
    %c0_i32 = arith.constant 0 : i32
    %c0_i32_0 = arith.constant 0 : i32
    %c0_i32_1 = arith.constant 0 : i32
    return %c0_i32, %c0_i32_0 : i32, i32
  }
  func.func @transform_8(%arg0: i32) -> (i32, i32) {
    %c0_i32 = arith.constant 0 : i32
    %c0_i32_0 = arith.constant 0 : i32
    %c0_i32_1 = arith.constant 0 : i32
    return %c0_i32, %c0_i32_0 : i32, i32
  }
  func.func @transform_9(%arg0: i32) -> (i32, i32) {
    %c0_i32 = arith.constant 0 : i32
    %c0_i32_0 = arith.constant 0 : i32
    %c0_i32_1 = arith.constant 0 : i32
    return %c0_i32, %c0_i32_0 : i32, i32
  }
  func.func @transform_10(%arg0: i32) -> (i32, i32) {
    %c0_i32 = arith.constant 0 : i32
    %c0_i32_0 = arith.constant 0 : i32
    %c0_i32_1 = arith.constant 0 : i32
    return %c0_i32, %c0_i32_0 : i32, i32
  }
  func.func @transform_11(%arg0: i32) -> (i32, i32) {
    %c0_i32 = arith.constant 0 : i32
    %c0_i32_0 = arith.constant 0 : i32
    return %arg0, %c0_i32 : i32, i32
  }
}

</mosaic_0001>

<bundles_post_ra>
// kernel: tpu_custom_call.1
= control target key start
LH: loop header
LB: loop body
LE: loop exit
PB: predicated region body
PF: predicated region fallthrough
CT: control target
= control target key end

     0   :  { %16 = vsyncpa [#allocation3], 0  ;;  %s1993_s0 = inlined_call_operand.vmem [shape: f32[8,43], index: 0, kind: input, shape index: {}]   ;;  %s1994_s1 = inlined_call_operand.vmem [shape: f32[8,8], index: 1, kind: input, shape index: {}]   ;;  %s1995_s2 = inlined_call_operand.hbm [shape: f32[43,128], index: 2, kind: input, shape index: {}]   ;;  %s1996_s3 = inlined_call_operand.vmem [shape: f32[1,128], index: 3, kind: input, shape index: {}]   ;;  %s1997_s4 = inlined_call_operand.vmem [shape: f32[128,640], index: 4, kind: input, shape index: {}]   ;;  %s1998_s5 = inlined_call_operand.hbm [shape: f32[1,640], index: 5, kind: input, shape index: {}]   ;;  %s1999_s6 = inlined_call_operand.vmem [shape: f32[8,128], index: 6, kind: input, shape index: {}]   ;;  %s2000_s7 = inlined_call_operand.vmem [shape: f32[128,4], index: 7, kind: input, shape index: {}]   ;;  %s2001_s8 = inlined_call_operand.vmem [shape: f32[1,4], index: 8, kind: input, shape index: {}]   ;;  %s2002_s9 = inlined_call_operand.vmem [shape: f32[512,4], index: 9, kind: input, shape index: {}]   ;;  %s2003_s10 = inlined_call_operand.vmem [shape: f32[1,4], index: 10, kind: input, shape index: {}]   ;;  %s2004_s11 = inlined_call_operand.vmem [shape: f32[8,1], index: 11, kind: output, shape index: {}]  }
   0x1   :  { %17 = vsyncpa [#allocation5], 0  ;;  %s1344_s17 = smov [#allocation2]   ;;  %s1296_s21 = scalar_lea.hbm %s1995_s2, 768 }
   0x2   :  { %s27_s18 = sshll.u32 %s1344_s17, 4  ;;  %p1297_p0 = scmp.ne.s32.totalorder %s1995_s2, %s1296_s21  ;;  %s28_s18 = int_to_ptr.vmem [resolvable:$true] %s27_s18 }
   0x3   :  { %p1300_p1 = scmp.lt.u32.totalorder %s1296_s21, %s1995_s2 }
   0x5   :  { %p1302_p2 = pnand %p1300_p1, %p1297_p0 }
   0x7   :  { %1305 = shalt.err (!%p1302_p2)
}
   0x8   :  { %s1306_s26 = scalar_lea.vmem %s28_s18, 768  ;;  %p1311_p4 = scmp.lt.s32.totalorder %s28_s18, %s28_s18 }
   0x9   :  { %p1307_p3 = scmp.ne.s32.totalorder %s28_s18, %s1306_s26  ;;  %p1312_p5 = scmp.lt.s32.totalorder %s1306_s26, %s1306_s26 }
   0xb   :  { %p1313_p6 = por %p1312_p5, %p1311_p4 }
   0xd   :  { %p1314_p7 = pnand %p1313_p6, %p1307_p3 }
   0xf   :  { %1317 = shalt.err (!%p1314_p7)
}
  0x10   :  { %s1345_s27 = smov 128   ;;  %s1346_s28 = smov 8  }
  0x11   :  { %33 = dma.hbm_to_vmem [thread:$0]  %s1995_s2, 768, %s28_s18, [#allocation3], %s1345_s27, %s1345_s27, %s1346_s28  }
  0x12   :  { %s1347_s12 = smov [#allocation4]   ;;  %s1318_s16 = scalar_lea.hbm %s1998_s5, 80 }
  0x13   :  { %s44_s13 = sshll.u32 %s1347_s12, 4  ;;  %p1319_p8 = scmp.ne.s32.totalorder %s1998_s5, %s1318_s16  ;;  %s45_s13 = int_to_ptr.vmem [resolvable:$true] %s44_s13 }
  0x14   :  { %p1322_p9 = scmp.lt.u32.totalorder %s1318_s16, %s1998_s5 }
  0x16   :  { %p1324_p10 = pnand %p1322_p9, %p1319_p8 }
  0x18   :  { %1327 = shalt.err (!%p1324_p10)
}
  0x19   :  { %s1328_s22 = scalar_lea.vmem %s45_s13, 80  ;;  %s1332_s2 = scalar_lea.vmem %s45_s13, 96 }
  0x1a   :  { %p1329_p11 = scmp.ne.s32.totalorder %s45_s13, %s1328_s22  ;;  %p1333_p12 = scmp.lt.s32.totalorder %s45_s13, %s45_s13 }
  0x1b   :  { %p1334_p13 = scmp.lt.s32.totalorder %s1332_s2, %s1328_s22 }
  0x1d   :  { %p1335_p0 = por %p1334_p13, %p1333_p12 }
  0x1f   :  { %p1336_p1 = pnand %p1335_p0, %p1329_p11 }
  0x21   :  { %1339 = shalt.err (!%p1336_p1)
}
  0x22   :  { %47 = dma.hbm_to_vmem [thread:$0]  %s1998_s5, 80, %s45_s13, [#allocation5]  }
  0x23   :  { %1340 = dma.done.wait [#allocation3], 768  }
  0x24   :  { %1341 = vsyncadd [#allocation3], 4294966528 }
  0x25   :  { %1342 = dma.done.wait [#allocation5], 80  }
  0x26   :  { %1343 = vsyncadd [#allocation5], 4294967216  ;;  %v1348_v0 = vmov 0.0|0.0   ;;  %vm1349_vm0 = vmmov 0   ;;  %v1350_v1 = vmov 0.0   ;;  %v65_v2 = vld [vmem:[#allocation2] sm:$0xff] }
  0x27   :  { %1095 = vmatprep.subr.bf16.mxu0 %v1348_v0  ;;  %1017 = vmatprep.mubr.msk.f32.mxu0 %vm1349_vm0, %v1350_v1  ;;  %v66_v3 = vld [vmem:[#allocation2 + $0x8] sm:$0xff]  ;;  %v67_v4 = vld [vmem:[#allocation2 + $0x10] sm:$0xff]  ;;  %v68_v6 = vld [vmem:[#allocation2 + $0x18] sm:$0xff]  ;;  %vm82_vm1 = vcmask 1042432   ;;  %vm1351_vm2 = vmmov 1   ;;  %vm78_vm4 = vcmask 351232  }
  0x28   :  { %328 = vmatprep.mubr.f32.mxu1 %v1350_v1  ;;  %v1096_v5 = vpack.c.bf16 %v66_v3, %v65_v2  ;;  %v158_v7 = vld [vmem:[%s1997_s4 + $0x8] sm:$0xff]  ;;  %v163_v8 = vld [vmem:[%s1997_s4 + $0x30] sm:$0xff]  ;;  %v1099_v9 = vpack.c.bf16 %v68_v6, %v67_v4  ;;  %v69_v10 = vld [vmem:[#allocation2 + $0x20] sm:$0xff]  ;;  %vm482_vm5 = vcmask 64512   ;;  %vm651_vm6 = vcmask 31744  }
  0x29   :  { %v1105_v11 = vpack.c.bf16 %v163_v8, %v158_v7  ;;  %v157_v12 = vld [vmem:[%s1997_s4] sm:$0xff]  ;;  %v162_v13 = vld [vmem:[%s1997_s4 + $0x28] sm:$0xff]  ;;  %v160_v16 = vld [vmem:[%s1997_s4 + $0x18] sm:$0xff]  ;;  %vm878_vm7 = vcmask 7168  }
  0x2a   :  { %1097 = vmatpush3.bf16.msra.mxu0 %v1096_v5  ;;  %v70_v14 = vld [vmem:[#allocation2 + $0x28] sm:$0x7]  ;;  %v1107_v15 = vpack.c.bf16 %v162_v13, %v157_v12  ;;  %v165_v17 = vld [vmem:[%s1997_s4 + $0x40] sm:$0xff]  ;;  %v168_v18 = vld [vmem:[%s1997_s4 + $0x58] sm:$0xff] }
  0x2b   :  { %1098 = vmatprep.subr.bf16.mxu0 %v1348_v0  ;;  %1106 = vmatprep.subr.bf16.mxu1 %v1105_v11  ;;  %v173_v19 = vld [vmem:[%s1997_s4 + $0x80] sm:$0xff]  ;;  %v167_v20 = vld [vmem:[%s1997_s4 + $0x50] sm:$0xff]  ;;  %vm1468_vm3 = vmpackc.low %vm82_vm1, %vm1351_vm2  ;;  %v1102_v24 = vpack.c.bf16 %v70_v14, %v69_v10  ;;  %v1137_v29 = vpack.c.bf16 %v165_v17, %v160_v16 }
  0x2c   :  { %1108 = vmatpush1.bf16.msra.mxu1 %v1107_v15  ;;  %v1109_v22 = vpack.c.bf16 %v173_v19, %v168_v18  ;;  %v172_v23 = vld [vmem:[%s1997_s4 + $0x78] sm:$0xff]  ;;  %v159_v25 = vld [vmem:[%s1997_s4 + $0x10] sm:$0xff]  ;;  %v178_v28 = vld [vmem:[%s1997_s4 + $0xa8] sm:$0xff] }
  0x2d   :  { %v164_v26 = vld [vmem:[%s1997_s4 + $0x38] sm:$0xff]  ;;  %v1111_v27 = vpack.c.bf16 %v172_v23, %v167_v20  ;;  %v183_v30 = vld [vmem:[%s1997_s4 + $0xd0] sm:$0xff]  ;;  %v177_v31 = vld [vmem:[%s1997_s4 + $0xa0] sm:$0xff] }
  0x2e   :  { %1100 = vmatpush3.bf16.msra.mxu0 %v1099_v9  ;;  %1110 = vmatprep.subr.bf16.mxu1 %v1109_v22  ;;  %v182_v32 = vld [vmem:[%s1997_s4 + $0xc8] sm:$0xff]  ;;  %v175_v34 = vld [vmem:[%s1997_s4 + $0x90] sm:$0xff]  ;;  %v1113_v35 = vpack.c.bf16 %v183_v30, %v178_v28  ;;  %v188_v37 = vld [vmem:[%s1997_s4 + $0xf8] sm:$0xff]  ;;  %v1139_v40 = vpack.c.bf16 %v164_v26, %v159_v25 }
  0x2f   :  { %1101 = vmatprep.subr.bf16.mxu0 %v1348_v0  ;;  %v170_v33 = vld [vmem:[%s1997_s4 + $0x68] sm:$0xff]  ;;  %v1115_v36 = vpack.c.bf16 %v182_v32, %v177_v31  ;;  %v193_v38 = vld [vmem:[%s1997_s4 + $0x120] sm:$0xff]  ;;  %v187_v42 = vld [vmem:[%s1997_s4 + $0xf0] sm:$0xff] }
  0x30   :  { %1112 = vmatpush1.bf16.msra.mxu1 %v1111_v27  ;;  %v64_v39 = vld [vmem:[%s1993_s0] sm:$0xff]  ;;  %v1117_v41 = vpack.c.bf16 %v193_v38, %v188_v37  ;;  %v192_v43 = vld [vmem:[%s1997_s4 + $0x118] sm:$0xff]  ;;  %v1141_v44 = vpack.c.bf16 %v175_v34, %v170_v33  ;;  %v174_v46 = vld [vmem:[%s1997_s4 + $0x88] sm:$0xff] }
  0x31   :  { %1114 = vmatprep.subr.bf16.mxu1 %v1113_v35  ;;  %v169_v45 = vld [vmem:[%s1997_s4 + $0x60] sm:$0xff]  ;;  %v180_v47 = vld [vmem:[%s1997_s4 + $0xb8] sm:$0xff]  ;;  %v198_v49 = vld [vmem:[%s1997_s4 + $0x148] sm:$0xff]  ;;  %v1119_v51 = vpack.c.bf16 %v192_v43, %v187_v42 }
  0x32   :  { %1104 = vmatpush3.bf16.msk.msra.mxu0 %vm1468_vm3, %v1102_v24  ;;  %v185_v48 = vld [vmem:[%s1997_s4 + $0xe0] sm:$0xff]  ;;  %v203_v50 = vld [vmem:[%s1997_s4 + $0x170] sm:$0xff]  ;;  %v1143_v52 = vpack.c.bf16 %v174_v46, %v169_v45  ;;  %v202_v56 = vld [vmem:[%s1997_s4 + $0x168] sm:$0xff] }
  0x33   :  { %1138 = vmatprep.subr.bf16.mxu0 %v1137_v29  ;;  %v179_v53 = vld [vmem:[%s1997_s4 + $0xb0] sm:$0xff]  ;;  %v1121_v54 = vpack.c.bf16 %v203_v50, %v198_v49  ;;  %v197_v55 = vld [vmem:[%s1997_s4 + $0x140] sm:$0xff]  ;;  %v1145_v57 = vpack.c.bf16 %v185_v48, %v180_v47  ;;  %v184_v58 = vld [vmem:[%s1997_s4 + $0xd8] sm:$0xff] }
  0x34   :  { %1116 = vmatpush1.bf16.msra.mxu1 %v1115_v36  ;;  %v208_v59 = vld [vmem:[%s1997_s4 + $0x198] sm:$0xff]  ;;  %v213_v60 = vld [vmem:[%s1997_s4 + $0x1c0] sm:$0xff]  ;;  %v190_v61 = vld [vmem:[%s1997_s4 + $0x108] sm:$0xff]  ;;  %v1123_v63 = vpack.c.bf16 %v202_v56, %v197_v55  ;;  %v1147_v2 = vpack.c.bf16 %v184_v58, %v179_v53 }
  0x35   :  { %1018 = vmatmul.mubr.msk.f32.vlgmr.msra.gmra.mrb[0].mxu0 %vm78_vm4, %v64_v39  ;;  %1118 = vmatprep.subr.bf16.mxu1 %v1117_v41  ;;  %v195_v62 = vld [vmem:[%s1997_s4 + $0x130] sm:$0xff]  ;;  %v189_v3 = vld [vmem:[%s1997_s4 + $0x100] sm:$0xff]  ;;  %v1125_v4 = vpack.c.bf16 %v213_v60, %v208_v59  ;;  %v212_v6 = vld [vmem:[%s1997_s4 + $0x1b8] sm:$0xff] }
  0x36   :  { %1140 = vmatpush1.bf16.msra.mxu0 %v1139_v40  ;;  %399 = vmatprep.mubr.f32.mxu0 %v1350_v1  ;;  %v207_v5 = vld [vmem:[%s1997_s4 + $0x190] sm:$0xff]  ;;  %v1149_v7 = vpack.c.bf16 %v195_v62, %v190_v61  ;;  %v194_v8 = vld [vmem:[%s1997_s4 + $0x128] sm:$0xff]  ;;  %v200_v11 = vld [vmem:[%s1997_s4 + $0x158] sm:$0xff] }
  0x37   :  { %1142 = vmatprep.subr.bf16.mxu0 %v1141_v44  ;;  %v218_v9 = vld [vmem:[%s1997_s4 + $0x1e8] sm:$0xff]  ;;  %v223_v10 = vld [vmem:[%s1997_s4 + $0x210] sm:$0xff]  ;;  %v205_v12 = vld [vmem:[%s1997_s4 + $0x180] sm:$0xff]  ;;  %v1127_v13 = vpack.c.bf16 %v212_v6, %v207_v5  ;;  %v1151_v14 = vpack.c.bf16 %v194_v8, %v189_v3 }
  0x38   :  { %1120 = vmatpush1.bf16.msra.mxu1 %v1119_v51  ;;  %v1129_v15 = vpack.c.bf16 %v223_v10, %v218_v9  ;;  %v217_v16 = vld [vmem:[%s1997_s4 + $0x1e0] sm:$0xff]  ;;  %v222_v17 = vld [vmem:[%s1997_s4 + $0x208] sm:$0xff]  ;;  %v1153_v18 = vpack.c.bf16 %v205_v12, %v200_v11  ;;  %v199_v19 = vld [vmem:[%s1997_s4 + $0x150] sm:$0xff] }
  0x39   :  { %1122 = vmatprep.subr.bf16.mxu1 %v1121_v54  ;;  %v204_v20 = vld [vmem:[%s1997_s4 + $0x178] sm:$0xff]  ;;  %v210_v21 = vld [vmem:[%s1997_s4 + $0x1a8] sm:$0xff]  ;;  %v215_v22 = vld [vmem:[%s1997_s4 + $0x1d0] sm:$0xff]  ;;  %v1131_v23 = vpack.c.bf16 %v222_v17, %v217_v16 }
  0x3a   :  { %1144 = vmatpush1.bf16.msra.mxu0 %v1143_v52  ;;  %v1155_v24 = vpack.c.bf16 %v204_v20, %v199_v19  ;;  %v1157_v25 = vpack.c.bf16 %v215_v22, %v210_v21  ;;  %v209_v26 = vld [vmem:[%s1997_s4 + $0x1a0] sm:$0xff]  ;;  %v214_v27 = vld [vmem:[%s1997_s4 + $0x1c8] sm:$0xff]  ;;  %v220_v28 = vld [vmem:[%s1997_s4 + $0x1f8] sm:$0xff] }
  0x3b   :  { %1146 = vmatprep.subr.bf16.mxu0 %v1145_v57  ;;  %v225_v29 = vld [vmem:[%s1997_s4 + $0x220] sm:$0xff]  ;;  %v1159_v30 = vpack.c.bf16 %v214_v27, %v209_v26  ;;  %v219_v32 = vld [vmem:[%s1997_s4 + $0x1f0] sm:$0xff]  ;;  %v224_v33 = vld [vmem:[%s1997_s4 + $0x218] sm:$0xff] }
  0x3c   :  { %1124 = vmatpush1.bf16.msra.mxu1 %v1123_v63  ;;  %v1161_v31 = vpack.c.bf16 %v225_v29, %v220_v28  ;;  %v1163_v34 = vpack.c.bf16 %v224_v33, %v219_v32  ;;  %v228_v35 = vld [vmem:[%s1997_s4 + $0x238] sm:$0xff]  ;;  %v233_v36 = vld [vmem:[%s1997_s4 + $0x260] sm:$0xff]  ;;  %v227_v38 = vld [vmem:[%s1997_s4 + $0x230] sm:$0xff] }
  0x3d   :  { %1126 = vmatprep.subr.bf16.mxu1 %v1125_v4  ;;  %v1133_v37 = vpack.c.bf16 %v233_v36, %v228_v35  ;;  %v232_v39 = vld [vmem:[%s1997_s4 + $0x258] sm:$0xff]  ;;  %v230_v40 = vld [vmem:[%s1997_s4 + $0x248] sm:$0xff]  ;;  %v235_v42 = vld [vmem:[%s1997_s4 + $0x270] sm:$0xff] }
  0x3e   :  { %1148 = vmatpush1.bf16.msra.mxu0 %v1147_v2  ;;  %v1135_v41 = vpack.c.bf16 %v232_v39, %v227_v38  ;;  %v229_v43 = vld [vmem:[%s1997_s4 + $0x240] sm:$0xff]  ;;  %v234_v44 = vld [vmem:[%s1997_s4 + $0x268] sm:$0xff]  ;;  %v1165_v45 = vpack.c.bf16 %v235_v42, %v230_v40  ;;  %v171_v55 = vld [vmem:[%s1997_s4 + $0x70] sm:$0xff] }
  0x3f   :  { %1150 = vmatprep.subr.bf16.mxu0 %v1149_v7  ;;  %v1167_v46 = vpack.c.bf16 %v234_v44, %v229_v43  ;;  %v886_v47 = vld [vmem:[%s1996_s3] ss:$0 sm:$0xff]  ;;  %v166_v49 = vld [vmem:[%s1997_s4 + $0x48] sm:$0xff]  ;;  %v176_v56 = vld [vmem:[%s1997_s4 + $0x98] sm:$0xff] }
  0x40   :  { %1128 = vmatpush1.bf16.msra.mxu1 %v1127_v13  ;;  %v161_v48 = vld [vmem:[%s1997_s4 + $0x20] sm:$0xff]  ;;  %v1173_v57 = vpack.c.bf16 %v176_v56, %v171_v55  ;;  %v186_v59 = vld [vmem:[%s1997_s4 + $0xe8] sm:$0xff]  ;;  %v191_v61 = vld [vmem:[%s1997_s4 + $0x110] sm:$0xff] }
  0x41   :  { %1130 = vmatprep.subr.bf16.mxu1 %v1129_v15  ;;  %v1170_v53 = vpack.c.bf16 %v166_v49, %v161_v48  ;;  %v181_v58 = vld [vmem:[%s1997_s4 + $0xc0] sm:$0xff]  ;;  %v196_v62 = vld [vmem:[%s1997_s4 + $0x138] sm:$0xff]  ;;  %v206_v3 = vld [vmem:[%s1997_s4 + $0x188] sm:$0xff] }
  0x42   :  { %1152 = vmatpush1.bf16.msra.mxu0 %v1151_v14  ;;  %v1176_v60 = vpack.c.bf16 %v186_v59, %v181_v58  ;;  %v1179_v63 = vpack.c.bf16 %v196_v62, %v191_v61  ;;  %v201_v2 = vld [vmem:[%s1997_s4 + $0x160] sm:$0xff]  ;;  %v211_v5 = vld [vmem:[%s1997_s4 + $0x1b0] sm:$0xff]  ;;  %v216_v6 = vld [vmem:[%s1997_s4 + $0x1d8] sm:$0xff] }
  0x43   :  { %1154 = vmatprep.subr.bf16.mxu0 %v1153_v18  ;;  %v1182_v4 = vpack.c.bf16 %v206_v3, %v201_v2  ;;  %v1185_v7 = vpack.c.bf16 %v216_v6, %v211_v5  ;;  %v221_v8 = vld [vmem:[%s1997_s4 + $0x200] sm:$0xff]  ;;  %v226_v9 = vld [vmem:[%s1997_s4 + $0x228] sm:$0xff]  ;;  %v231_v11 = vld [vmem:[%s1997_s4 + $0x250] sm:$0xff] }
  0x44   :  { %1132 = vmatpush1.bf16.msra.mxu1 %v1131_v23  ;;  %v1188_v10 = vpack.c.bf16 %v226_v9, %v221_v8  ;;  %v236_v12 = vld [vmem:[%s1997_s4 + $0x278] sm:$0xff]  ;;  %v679_v14 = vld [vmem:[%s2002_s9 + $0x80] sm:$0xff]  ;;  %v680_v15 = vld [vmem:[%s2002_s9 + $0x88] sm:$0xff] }
  0x45   :  { %1134 = vmatprep.subr.bf16.mxu1 %v1133_v37  ;;  %v1191_v13 = vpack.c.bf16 %v236_v12, %v231_v11  ;;  %v481_v16 = vld [vmem:[%s1999_s6] sm:$0xff]  ;;  %v1217_v17 = vpack.c.bf16 %v680_v15, %v679_v14  ;;  %v664_v19 = vld [vmem:[%s2002_s9 + $0x8] sm:$0xff]  ;;  %v681_v20 = vld [vmem:[%s2002_s9 + $0x90] sm:$0xff] }
  0x46   :  { %1156 = vmatpush1.bf16.msra.mxu0 %v1155_v24  ;;  %v663_v18 = vld [vmem:[%s2002_s9] sm:$0xff]  ;;  %v682_v21 = vld [vmem:[%s2002_s9 + $0x98] sm:$0xff]  ;;  %v665_v24 = vld [vmem:[%s2002_s9 + $0x10] sm:$0xff] }
  0x47   :  { %1158 = vmatprep.subr.bf16.mxu0 %v1157_v25  ;;  %v1219_v22 = vpack.c.bf16 %v664_v19, %v663_v18  ;;  %v1221_v23 = vpack.c.bf16 %v682_v21, %v681_v20  ;;  %v666_v25 = vld [vmem:[%s2002_s9 + $0x18] sm:$0xff]  ;;  %v683_v26 = vld [vmem:[%s2002_s9 + $0xa0] sm:$0xff]  ;;  %v684_v27 = vld [vmem:[%s2002_s9 + $0xa8] sm:$0xff] }
  0x48   :  { %1136 = vmatpush1.bf16.msra.mxu1 %v1135_v41  ;;  %v1223_v28 = vpack.c.bf16 %v666_v25, %v665_v24  ;;  %v1225_v29 = vpack.c.bf16 %v684_v27, %v683_v26  ;;  %v685_v32 = vld [vmem:[%s2002_s9 + $0xb0] sm:$0xff]  ;;  %v686_v33 = vld [vmem:[%s2002_s9 + $0xb8] sm:$0xff]  ;;  %v687_v38 = vld [vmem:[%s2002_s9 + $0xc0] sm:$0xff] }
  0x49   :  { %1169 = vmatprep.subr.bf16.mxu1 %v1348_v0  ;;  %v1229_v35 = vpack.c.bf16 %v686_v33, %v685_v32  ;;  %v669_v36 = vld [vmem:[%s2002_s9 + $0x30] sm:$0xff]  ;;  %v670_v37 = vld [vmem:[%s2002_s9 + $0x38] sm:$0xff]  ;;  %v688_v39 = vld [vmem:[%s2002_s9 + $0xc8] sm:$0xff] }
  0x4a   :  { %1160 = vmatpush1.bf16.msra.mxu0 %v1159_v30  ;;  %v667_v30 = vld [vmem:[%s2002_s9 + $0x20] sm:$0xff]  ;;  %v1231_v40 = vpack.c.bf16 %v670_v37, %v669_v36  ;;  %v1233_v41 = vpack.c.bf16 %v688_v39, %v687_v38  ;;  %v672_v43 = vld [vmem:[%s2002_s9 + $0x48] sm:$0xff]  ;;  %v689_v44 = vld [vmem:[%s2002_s9 + $0xd0] sm:$0xff] }
  0x4b   :  { %1162 = vmatprep.subr.bf16.mxu0 %v1161_v31  ;;  %v668_v31 = vld [vmem:[%s2002_s9 + $0x28] sm:$0xff]  ;;  %v671_v42 = vld [vmem:[%s2002_s9 + $0x40] sm:$0xff]  ;;  %v673_v48 = vld [vmem:[%s2002_s9 + $0x50] sm:$0xff] }
  0x4c   :  { %v674_v49 = vld [vmem:[%s2002_s9 + $0x58] sm:$0xff]  ;;  %v676_v55 = vld [vmem:[%s2002_s9 + $0x68] sm:$0xff]  ;;  %v560_v3 = vld [vmem:[%s2000_s7 + $0x10] sm:$0xff] }
  0x4d   :  { %v694_v58 = vld [vmem:[%s2002_s9 + $0xf8] sm:$0xff]  ;;  %v559_v2 = vld [vmem:[%s2000_s7 + $0x8] sm:$0xff]  ;;  %v570_v19 = vld [vmem:[%s2000_s7 + $0x60] sm:$0xff] }
  0x4e   :  { %1164 = vmatpush1.bf16.msra.mxu0 %v1163_v34  ;;  %v1227_v34 = vpack.c.bf16 %v668_v31, %v667_v30  ;;  %v678_v61 = vld [vmem:[%s2002_s9 + $0x78] sm:$0xff]  ;;  %v563_v8 = vld [vmem:[%s2000_s7 + $0x28] sm:$0xff]  ;;  %v711_v24 = vld [vmem:[%s2002_s9 + $0x180] sm:$0xff] }
  0x4f   :  { %1166 = vmatprep.subr.bf16.mxu0 %v1165_v45  ;;  %v690_v45 = vld [vmem:[%s2002_s9 + $0xd8] sm:$0xff]  ;;  %v567_v14 = vld [vmem:[%s2000_s7 + $0x48] sm:$0xff] }
  0x50   :  { %v561_v5 = vld [vmem:[%s2000_s7 + $0x18] sm:$0xff]  ;;  %v571_v20 = vld [vmem:[%s2000_s7 + $0x68] sm:$0xff] }
  0x51   :  { %v1197_v6 = vpack.c.bf16 %v561_v5, %v560_v3  ;;  %v565_v11 = vld [vmem:[%s2000_s7 + $0x38] sm:$0xff]  ;;  %v1212_v21 = vpack.c.bf16 %v571_v20, %v570_v19  ;;  %v712_v25 = vld [vmem:[%s2002_s9 + $0x188] sm:$0xff]  ;;  %v717_v3 = vld [vmem:[%s2002_s9 + $0x1b0] sm:$0xff] }
  0x52   :  { %1168 = vmatpush1.bf16.msra.mxu0 %v1167_v46  ;;  %v1235_v46 = vpack.c.bf16 %v672_v43, %v671_v42  ;;  %v1249_v26 = vpack.c.bf16 %v712_v25, %v711_v24  ;;  %v705_v19 = vld [vmem:[%s2002_s9 + $0x150] sm:$0xff]  ;;  %v706_v20 = vld [vmem:[%s2002_s9 + $0x158] sm:$0xff]  ;;  %v707_v25 = vld [vmem:[%s2002_s9 + $0x160] sm:$0xff] }
  0x53   :  { %1193 = vmatprep.subr.bf16.mxu0 %v1348_v0 }
 0x108   :  { %v152_v50 = vpop.f32.mrb[0].mxu0 }
 0x109   :  { %v153_v51 = vadd.f32 %v886_v47, %v152_v50  ;;  %v1019_v52 = vpop.f32.mrb[1].mxu0  ;;  %v1237_v47 = vpack.c.bf16 %v690_v45, %v689_v44  ;;  %v691_v50 = vld [vmem:[%s2002_s9 + $0xe0] sm:$0xff] }
 0x10a   :  { %v1239_v52 = vpack.c.bf16 %v674_v49, %v673_v48  ;;  %v695_v45 = vld [vmem:[%s2002_s9 + $0x100] sm:$0xff]  ;;  %v713_v49 = vld [vmem:[%s2002_s9 + $0x190] sm:$0xff] }
 0x10b   :  { %v156_v54 = vmax.f32 %v153_v51, 0.0  ;;  %v692_v51 = vld [vmem:[%s2002_s9 + $0xe8] sm:$0xff] }
 0x10d   :  { %329 = vmatmul.mubr.f32.vlgmr.msra.gmra.mrb[0].mxu1 %v156_v54  ;;  %400 = vmatmul.mubr.f32.vlgmr.msra.gmra.mrb[2].mxu0 %v156_v54 }
 0x10e   :  { %1171 = vmatpush3.bf16.msra.mxu1 %v1170_v53  ;;  %1052 = vmatprep.mubr.msk.f32.mxu1 %vm1349_vm0, %v1350_v1  ;;  %v1241_v53 = vpack.c.bf16 %v692_v51, %v691_v50  ;;  %v714_v50 = vld [vmem:[%s2002_s9 + $0x198] sm:$0xff] }
 0x10f   :  { %1172 = vmatprep.subr.bf16.mxu1 %v1348_v0  ;;  %1092 = vmatprep.mubr.msk.f32.mxu0 %vm1349_vm0, %v1350_v1 }
 0x112   :  { %1174 = vmatpush3.bf16.msra.mxu1 %v1173_v57  ;;  %v693_v57 = vld [vmem:[%s2002_s9 + $0xf0] sm:$0xff] }
 0x113   :  { %1175 = vmatprep.subr.bf16.mxu1 %v1348_v0  ;;  %v1245_v59 = vpack.c.bf16 %v694_v58, %v693_v57  ;;  %v698_v57 = vld [vmem:[%s2002_s9 + $0x118] sm:$0xff] }
 0x116   :  { %1177 = vmatpush3.bf16.msra.mxu1 %v1176_v60  ;;  %v677_v60 = vld [vmem:[%s2002_s9 + $0x70] sm:$0xff] }
 0x117   :  { %1178 = vmatprep.subr.bf16.mxu1 %v1348_v0  ;;  %v1247_v62 = vpack.c.bf16 %v678_v61, %v677_v60  ;;  %v716_v60 = vld [vmem:[%s2002_s9 + $0x1a8] sm:$0xff] }
 0x11a   :  { %1180 = vmatpush3.bf16.msra.mxu1 %v1179_v63  ;;  %v558_v63 = vld [vmem:[%s2000_s7] sm:$0xff] }
 0x11b   :  { %1181 = vmatprep.subr.bf16.mxu1 %v1348_v0 }
 0x11e   :  { %1183 = vmatpush3.bf16.msra.mxu1 %v1182_v4  ;;  %v1194_v4 = vpack.c.bf16 %v559_v2, %v558_v63  ;;  %v699_v63 = vld [vmem:[%s2002_s9 + $0x120] sm:$0xff]  ;;  %v700_v2 = vld [vmem:[%s2002_s9 + $0x128] sm:$0xff] }
 0x11f   :  { %1184 = vmatprep.subr.bf16.mxu1 %v1348_v0  ;;  %v1259_v5 = vpack.c.bf16 %v700_v2, %v699_v63 }
 0x120   :  { %1195 = vmatpush3.bf16.msra.mxu0 %v1194_v4  ;;  %v718_v4 = vld [vmem:[%s2002_s9 + $0x1b8] sm:$0xff] }
 0x121   :  { %1196 = vmatprep.subr.bf16.mxu0 %v1348_v0 }
 0x122   :  { %1186 = vmatpush3.bf16.msra.mxu1 %v1185_v7  ;;  %v562_v7 = vld [vmem:[%s2000_s7 + $0x20] sm:$0xff] }
 0x123   :  { %1187 = vmatprep.subr.bf16.mxu1 %v1348_v0  ;;  %v1200_v9 = vpack.c.bf16 %v563_v8, %v562_v7  ;;  %v701_v7 = vld [vmem:[%s2002_s9 + $0x130] sm:$0xff]  ;;  %v702_v8 = vld [vmem:[%s2002_s9 + $0x138] sm:$0xff] }
 0x124   :  { %1198 = vmatpush3.bf16.msra.mxu0 %v1197_v6  ;;  %v1261_v6 = vpack.c.bf16 %v718_v4, %v717_v3 }
 0x125   :  { %1199 = vmatprep.subr.bf16.mxu0 %v1348_v0 }
 0x126   :  { %1189 = vmatpush3.bf16.msra.mxu1 %v1188_v10  ;;  %v564_v10 = vld [vmem:[%s2000_s7 + $0x30] sm:$0xff] }
 0x127   :  { %1190 = vmatprep.subr.bf16.mxu1 %v1348_v0  ;;  %v1203_v12 = vpack.c.bf16 %v565_v11, %v564_v10  ;;  %v720_v10 = vld [vmem:[%s2002_s9 + $0x1c8] sm:$0xff]  ;;  %v1263_v11 = vpack.c.bf16 %v702_v8, %v701_v7 }
 0x128   :  { %1201 = vmatpush3.bf16.msra.mxu0 %v1200_v9  ;;  %v719_v9 = vld [vmem:[%s2002_s9 + $0x1c0] sm:$0xff] }
 0x129   :  { %1202 = vmatprep.subr.bf16.mxu0 %v1348_v0 }
 0x12a   :  { %1192 = vmatpush3.bf16.msra.mxu1 %v1191_v13  ;;  %v566_v13 = vld [vmem:[%s2000_s7 + $0x40] sm:$0xff] }
 0x12b   :  { %1055 = vmatprep.subr.mxu1 %v1350_v1  ;;  %v1206_v15 = vpack.c.bf16 %v567_v14, %v566_v13  ;;  %v703_v13 = vld [vmem:[%s2002_s9 + $0x140] sm:$0xff]  ;;  %v704_v14 = vld [vmem:[%s2002_s9 + $0x148] sm:$0xff] }
 0x12c   :  { %1204 = vmatpush3.bf16.msra.mxu0 %v1203_v12  ;;  %v1265_v12 = vpack.c.bf16 %v720_v10, %v719_v9 }
 0x12d   :  { %1053 = vmatmul.mubr.f32.vlgmr.msra.gmra.mrb[2].mxu1 %v156_v54  ;;  %v675_v54 = vld [vmem:[%s2002_s9 + $0x60] sm:$0xff]  ;;  %1205 = vmatprep.subr.bf16.mxu0 %v1348_v0 }
 0x12e   :  { %1056 = vmatpush3.msra.mxu1 %v481_v16  ;;  %1057 = vmatprep.mubr.msk.f32.mxu1 %vm1349_vm0, %v1350_v1  ;;  %v480_v1 = vld [vmem:[%s1994_s1] sm:$0xff]  ;;  %v1243_v56 = vpack.c.bf16 %v676_v55, %v675_v54  ;;  %v568_v16 = vld [vmem:[%s2000_s7 + $0x50] sm:$0xff]  ;;  %v1253_v55 = vpack.c.bf16 %v714_v50, %v713_v49 }
 0x12f   :  { %1218 = vmatprep.subr.bf16.mxu1 %v1217_v17  ;;  %v569_v17 = vld [vmem:[%s2000_s7 + $0x58] sm:$0xff] }
 0x130   :  { %1207 = vmatpush3.bf16.msra.mxu0 %v1206_v15  ;;  %v1209_v18 = vpack.c.bf16 %v569_v17, %v568_v16  ;;  %v721_v15 = vld [vmem:[%s2002_s9 + $0x1d0] sm:$0xff]  ;;  %v722_v16 = vld [vmem:[%s2002_s9 + $0x1d8] sm:$0xff]  ;;  %v1267_v17 = vpack.c.bf16 %v704_v14, %v703_v13 }
 0x131   :  { %1208 = vmatprep.subr.bf16.mxu0 %v1348_v0 }
 0x134   :  { %1210 = vmatpush3.bf16.msra.mxu0 %v1209_v18  ;;  %v1269_v18 = vpack.c.bf16 %v722_v16, %v721_v15 }
 0x135   :  { %1058 = vmatmul.mubr.msk.f32.vlgmr.msra.gmra.mrb[2].mxu1 %vm482_vm5, %v480_v1  ;;  %1211 = vmatprep.subr.bf16.mxu0 %v1348_v0  ;;  %v572_v1 = vld [vmem:[%s2000_s7 + $0x70] sm:$0xff] }
 0x136   :  { %1220 = vmatpush3.bf16.msra.mxu1 %v1219_v22  ;;  %v573_v22 = vld [vmem:[%s2000_s7 + $0x78] sm:$0xff] }
 0x137   :  { %1222 = vmatprep.subr.bf16.mxu1 %v1221_v23  ;;  %v1215_v23 = vpack.c.bf16 %v573_v22, %v572_v1  ;;  %v724_v1 = vld [vmem:[%s2002_s9 + $0x1e8] sm:$0xff]  ;;  %v1271_v22 = vpack.c.bf16 %v706_v20, %v705_v19 }
 0x138   :  { %1213 = vmatpush3.bf16.msra.mxu0 %v1212_v21  ;;  %v723_v21 = vld [vmem:[%s2002_s9 + $0x1e0] sm:$0xff] }
 0x139   :  { %1214 = vmatprep.subr.bf16.mxu0 %v1348_v0  ;;  %v239_v0 = vlaneseq  ;;  %v1273_v24 = vpack.c.bf16 %v724_v1, %v723_v21 }
 0x13a   :  { %1224 = vmatpush3.bf16.msra.mxu1 %v1223_v28 }
 0x13b   :  { %1226 = vmatprep.subr.bf16.mxu1 %v1225_v29  ;;  %v1874_v27 = vshrl.u32 %v239_v0, 7  ;;  %v1877_v29 = vld [vmem:[#allocation4] sm:$0x1f] }
 0x13c   :  { %1216 = vmatpush3.bf16.msra.mxu0 %v1215_v23  ;;  %v725_v0 = vld [vmem:[%s2002_s9 + $0x1f0] sm:$0xff] }
 0x13d   :  { %1250 = vmatprep.subr.bf16.mxu0 %v1249_v26  ;;  %v241_v28 = vsub.s32 0, %v1874_v27  ;;  %v245_v30 = vsub.s32 1, %v1874_v27  ;;  %v257_v42 = vsub.s32 4, %v1874_v27  ;;  %v249_v23 = vsub.s32 2, %v1874_v27  ;;  %v708_v26 = vld [vmem:[%s2002_s9 + $0x168] sm:$0xff] }
 0x13e   :  { %1228 = vmatpush3.bf16.msra.mxu1 %v1227_v34 }
 0x13f   :  { %1230 = vmatprep.subr.bf16.mxu1 %v1229_v35  ;;  %v242_v31 = vrot.slane %v1877_v29, %v241_v28  ;;  %v246_v32 = vrot.slane %v1877_v29, %v245_v30  ;;  %v258_v44 = vrot.slane %v1877_v29, %v257_v42  ;;  %v726_v28 = vld [vmem:[%s2002_s9 + $0x1f8] sm:$0xff]  ;;  %v250_v30 = vrot.slane %v1877_v29, %v249_v23 }
 0x142   :  { %1232 = vmatpush3.bf16.msra.mxu1 %v1231_v40 }
 0x143   :  { %1234 = vmatprep.subr.bf16.mxu1 %v1233_v41  ;;  %v253_v41 = vsub.s32 3, %v1874_v27  ;;  %v1275_v27 = vpack.c.bf16 %v708_v26, %v707_v25 }
 0x145   :  { %v254_v43 = vrot.slane %v1877_v29, %v253_v41 }
 0x146   :  { %1236 = vmatpush3.bf16.msra.mxu1 %v1235_v46  ;;  %v696_v46 = vld [vmem:[%s2002_s9 + $0x108] sm:$0xff] }
 0x147   :  { %1238 = vmatprep.subr.bf16.mxu1 %v1237_v47 }
 0x14a   :  { %1240 = vmatpush3.bf16.msra.mxu1 %v1239_v52 }
 0x14b   :  { %1242 = vmatprep.subr.bf16.mxu1 %v1241_v53  ;;  %v1251_v53 = vpack.c.bf16 %v696_v46, %v695_v45 }
 0x14e   :  { %1244 = vmatpush3.bf16.msra.mxu1 %v1243_v56  ;;  %v697_v56 = vld [vmem:[%s2002_s9 + $0x110] sm:$0xff] }
 0x14f   :  { %1246 = vmatprep.subr.bf16.mxu1 %v1245_v59  ;;  %v715_v59 = vld [vmem:[%s2002_s9 + $0x1a0] sm:$0xff]  ;;  %v1255_v61 = vpack.c.bf16 %v698_v57, %v697_v56 }
 0x152   :  { %1248 = vmatpush3.bf16.msra.mxu1 %v1247_v62  ;;  %v1257_v62 = vpack.c.bf16 %v716_v60, %v715_v59 }
 0x1e0   :  { %v330_v33 = vpop.f32.mrb[0].mxu1  ;;  %v1882_v34 = vpop.f32.mrb[2].mxu0 }
 0x1e1   :  { %v331_v35 = vadd.f32 %v330_v33, %v242_v31  ;;  %v332_v36 = vpop.f32.mrb[1].mxu1  ;;  %v403_v37 = vpop.f32.mrb[3].mxu0  ;;  %v1277_v31 = vpack.c.bf16 %v726_v28, %v725_v0  ;;  %v710_v33 = vld [vmem:[%s2002_s9 + $0x178] sm:$0xff] }
 0x1e2   :  { %v333_v38 = vadd.f32 %v332_v36, %v246_v32  ;;  %v404_v47 = vadd.f32 %v403_v37, %v254_v43  ;;  %v709_v32 = vld [vmem:[%s2002_s9 + $0x170] sm:$0xff]  ;;  %v402_v36 = vadd.f32 %v1882_v34, %v250_v30  ;;  %v891_v34 = vld [vmem:[%s2003_s10] ss:$0 sm:$0xff] }
 0x1e3   :  { %v476_v40 = vmax.f32 %v331_v35, 0.0  ;;  %v1279_v35 = vpack.c.bf16 %v710_v33, %v709_v32 }
 0x1e4   :  { %v477_v39 = vmax.f32 %v333_v38, 0.0  ;;  %v479_v58 = vmax.f32 %v404_v47, 0.0  ;;  %v478_v37 = vmax.f32 %v402_v36, 0.0 }
 0x1e6   :  { %798 = vmatprep.mubr.f32.mxu1 %v477_v39 }
 0x1e7   :  { %799 = vmatmul.mubr.f32.vlgmr.msra.gmra.mrb[4].mxu1 %v476_v40  ;;  %v890_v40 = vld [vmem:[%s2001_s8] ss:$0 sm:$0xff] }
 0x208   :  { %v552_v48 = vpop.f32.mrb[2].mxu1 }
 0x209   :  { %v1281_v51 = vadd.f32 %v552_v48, %v258_v44  ;;  %v1059_v52 = vpop.f32.mrb[3].mxu1 }
 0x20b   :  { %v557_v54 = vmax.f32 %v1281_v51, 0.0 }
 0x20d   :  { %1093 = vmatmul.mubr.f32.vlgmr.msra.gmra.mrb[4].mxu0 %v557_v54 }
 0x20e   :  { %1252 = vmatpush3.bf16.msra.mxu0 %v1251_v53  ;;  %868 = vmatprep.mubr.f32.mxu0 %v479_v58 }
 0x20f   :  { %1254 = vmatprep.subr.bf16.mxu0 %v1253_v55 }
 0x212   :  { %1256 = vmatpush3.bf16.msra.mxu0 %v1255_v61 }
 0x213   :  { %1258 = vmatprep.subr.bf16.mxu0 %v1257_v62 }
 0x216   :  { %1260 = vmatpush3.bf16.msra.mxu0 %v1259_v5 }
 0x217   :  { %1262 = vmatprep.subr.bf16.mxu0 %v1261_v6 }
 0x21a   :  { %1264 = vmatpush3.bf16.msra.mxu0 %v1263_v11 }
 0x21b   :  { %1266 = vmatprep.subr.bf16.mxu0 %v1265_v12 }
 0x21e   :  { %1268 = vmatpush3.bf16.msra.mxu0 %v1267_v17 }
 0x21f   :  { %1270 = vmatprep.subr.bf16.mxu0 %v1269_v18 }
 0x222   :  { %1272 = vmatpush3.bf16.msra.mxu0 %v1271_v22 }
 0x223   :  { %1274 = vmatprep.subr.bf16.mxu0 %v1273_v24 }
 0x226   :  { %1276 = vmatpush3.bf16.msra.mxu0 %v1275_v27 }
 0x227   :  { %1278 = vmatprep.subr.bf16.mxu0 %v1277_v31 }
 0x22a   :  { %1280 = vmatpush3.bf16.msra.mxu0 %v1279_v35 }
 0x22d   :  { %869 = vmatmul.mubr.f32.vlgmr.msra.gmra.mrb[6].mxu0 %v478_v37 }
 0x2ba   :  { %v967_v38 = vpop.f32.mrb[4].mxu1 }
 0x2bb   :  { %v968_v29 = vpop.f32.mrb[5].mxu1 }
 0x2bc   :  { %v969_v39 = vadd.f32 %v968_v29, %v967_v38 }
 0x2be   :  { %v801_v47 = vadd.f32 %v969_v39, %v891_v34 }
 0x2e0   :  { %v647_v41 = vpop.f32.mrb[4].mxu0 }
 0x2e1   :  { %v648_v42 = vadd.f32 %v890_v40, %v647_v41  ;;  %v1094_v43 = vpop.f32.mrb[5].mxu0 }
 0x2e3   :  { %v652_v44 = vsel %vm651_vm6, %v648_v42, -inf }
 0x2e4   :  { %653 = vmax.xlane.f32.xlu0 %v652_v44 }
 0x300   :  { %v1002_v45 = vpop.f32.mrb[6].mxu0 }
 0x301   :  { %v1003_v46 = vpop.f32.mrb[7].mxu0 }
 0x302   :  { %v1004_v48 = vadd.f32 %v1003_v46, %v1002_v45 }
 0x304   :  { %v871_v49 = vadd.f32 %v1004_v48, %v801_v47 }
 0x371   :  { %v654_v50 = vpop.xlane.xlu0 %653 }
 0x372   :  { %v655_v51 = vsub.f32 %v648_v42, %v654_v50 }
 0x374   :  { %v656_v52 = vmul.f32 1.442695, %v655_v51 }
 0x376   :  { %1292 = vpow2.f32 %v656_v52 }
 0x380   :  { %v1293_v53 = vpop.eup %1292 }
 0x381   :  { %v658_v54 = vsel %vm651_vm6, %v1293_v53, 0.0 }
 0x382   :  { %659 = vadd.xlane.f32.xlu0 %v658_v54 }
 0x40f   :  { %v660_v55 = vpop.xlane.xlu0 %659 }
 0x410   :  { %1294 = vrcp.f32 %v660_v55 }
 0x41a   :  { %v1295_v56 = vpop.eup %1294 }
 0x41b   :  { %v662_v57 = vmul.f32 %v1295_v56, %v1293_v53 }
 0x41d   :  { %v874_v58 = vmul.f32 %v871_v49, %v662_v57 }
 0x41f   :  { %v875_v59 = vsel %vm651_vm6, %v874_v58, 0.0 }
 0x420   :  { %876 = vadd.xlane.f32.xlu1 %v875_v59 }
 0x4ad   :  { %v877_v60 = vpop.xlane.xlu1 %876 }
 0x4ae   :  { %879 = vst.msk [vmem:[%s2004_s11] sm:$0xff] %vm878_vm7, %v877_v60 }
 0x4af   :  { %884 = vsyncpa [#allocation3], 1 }
 0x4b0   :  { %885 = vsyncpa [#allocation5], 1 }

</bundles_post_ra>
